<compile_context>
chip_gen: v7x
topology: tpu7x:2x2x1
jax: 0.10.0
libtpu: 0.0.40
codegen_flags: <defaults>
</compile_context>

<pallas_src>
import jax
import jax.numpy as jnp
import numpy as np
from jax.experimental import pallas as pl
from jax.experimental.pallas import tpu as pltpu

_LANES = 128
_SUBLANES = 8


def _copy_kernel(x_ref, o_ref):
    # Whole-tile VMEM -> VMEM copy (identity forward). ~2 vld + 2 vst for 8 KiB.
    o_ref[...] = x_ref[...]


def _snapshot_copy_impl(x):
    """Identity (snapshot) forward as a single grid-less Pallas VMEM copy.

    Always traced under jit (see `_snapshot_copy` below), so the reshapes are
    free bitcasts and the pallas_call is the only device dispatch.
    """
    orig_shape = x.shape
    n = x.size

    # Present a lane-dense (rows, 128) view when the element count allows it
    # (always true for 2x4x16x16 f32 = 2048 = 16 x 128) so stores are full,
    # unmasked vst.  Otherwise pass the array through in its natural shape —
    # at launch-bound sizes a masked store costs nanoseconds and is not worth
    # any pad/slice copy.
    if n % (_SUBLANES * _LANES) == 0:
        view = x.reshape(n // _LANES, _LANES)
    else:
        view = x

    out = pl.pallas_call(
        _copy_kernel,
        out_shape=jax.ShapeDtypeStruct(view.shape, view.dtype),
        # Grid-less call: full array resident in VMEM, single kernel invocation,
        # no pipeline prologue/epilogue, no double buffering.
        in_specs=[pl.BlockSpec(memory_space=pltpu.MemorySpace.VMEM)],
        out_specs=pl.BlockSpec(memory_space=pltpu.MemorySpace.VMEM),
        # Output reuses the input's HBM buffer (identity aliasing).
        input_output_aliases={0: 0},
        # Advisory: zero-flop, 2*nbytes custom call — don't let XLA's scheduler
        # treat the opaque call as expensive.
        cost_estimate=pl.CostEstimate(
            flops=0,
            transcendentals=0,
            bytes_accessed=2 * x.size * x.dtype.itemsize,
        ),
    )(view)

    return out.reshape(orig_shape)


# jit so wrapper reshapes fuse to metadata (single dispatch); donate the input so
# the input_output_aliases above can actually reuse the caller's HBM buffer.
_snapshot_copy = jax.jit(_snapshot_copy_impl, donate_argnums=(0,))


class CustomModulePallas:
    """JAX/Pallas mirror of the PyTorch CustomModule (identity + snapshot)."""

    def __init__(self):
        self.snapshot = None
        self.num_to_preserve = 10  # preserved attribute from the reference module

    def forward(self, x):
        # Fastest faithful path would be `self.snapshot = x; return x` (JAX arrays
        # are immutable, no defensive copy needed); the Pallas copy is kept because
        # the exercise mandates a kernel.
        # TODO(synk): if forward itself is traced under an outer jax.jit,
        # `self.snapshot` captures a tracer — return the snapshot explicitly there.
        y = _snapshot_copy(x)
        self.snapshot = y  # mirrors `self.snapshot = x` (aliases the same buffer)
        return y


if __name__ == "__main__":
    key = jax.random.PRNGKey(0)
    # Small NCHW input consistent with the module: (batch=2, C=4, H=16, W=16)
    x = jax.random.normal(key, (2, 4, 16, 16), dtype=jnp.float32)

    # Host reference taken BEFORE the call: the input buffer is donated to the
    # kernel (identity aliasing), so `x` may not be readable afterwards.
    x_host = np.asarray(jax.device_get(x))

    mod = CustomModulePallas()
    y = mod.forward(x)
    y = jax.block_until_ready(y)

    assert y.shape == x_host.shape and y.dtype == x_host.dtype
    assert np.array_equal(np.asarray(jax.device_get(y)), x_host)
    assert mod.snapshot is not None
    print("KERNEL_OK")
</pallas_src>

<mosaic_0001>
module attributes {stable_mosaic.version = 11 : i64} {
  func.func @_copy_kernel(%arg0: memref<16x128xf32, #tpu.memory_space<vmem>>, %arg1: memref<16x128xf32, #tpu.memory_space<vmem>>) attributes {dimension_semantics = [], scalar_prefetch = 0 : i64, scratch_operands = 0 : i64, tpu.core_type = #tpu.core_type<tc>} {
    %c0 = arith.constant 0 : index
    %c0_0 = arith.constant 0 : index
    %0 = vector.load %arg0[%c0, %c0_0] : memref<16x128xf32, #tpu.memory_space<vmem>>, vector<16x128xf32>
    %c0_1 = arith.constant 0 : index
    %c0_2 = arith.constant 0 : index
    %1 = vector.load %arg1[%c0_1, %c0_2] : memref<16x128xf32, #tpu.memory_space<vmem>>, vector<16x128xf32>
    tpu.vector_store %arg1[%c0_1, %c0_2], %0 {strides = array<i32>} : memref<16x128xf32, #tpu.memory_space<vmem>>, vector<16x128xf32>,
    return
  }
}

</mosaic_0001>

<bundles_post_ra>
// kernel: _snapshot_copy_impl.1
= control target key start
LH: loop header
LB: loop body
LE: loop exit
PB: predicated region body
PF: predicated region fallthrough
CT: control target
= control target key end

     0   :  { %s38_s0 = inlined_call_operand.vmem [shape: f32[16,128], index: 0, kind: input, shape index: {}, may-alias: {0,1}]   ;;  %s39_s1 = inlined_call_operand.vmem [shape: f32[16,128], index: 1, kind: output, shape index: {}, may-alias: {0,1}]  }
   0x1   :  { %v8_v0 = vld [vmem:[%s38_s0] sm:$0xff]  ;;  %v9_v1 = vld [vmem:[%s38_s0 + $0x8] sm:$0xff] }
   0x2   :  { %10 = vst [vmem:[%s39_s1] sm:$0xff] %v8_v0  ;;  %11 = vst [vmem:[%s39_s1 + $0x8] sm:$0xff] %v9_v1 }

</bundles_post_ra>
